<compile_context>
chip_gen: v7x
topology: tpu7x:2x2x1
jax: 0.10.0
libtpu: 0.0.40
codegen_flags: <defaults>
</compile_context>

<pallas_src>
import functools

import numpy as np

import jax
import jax.numpy as jnp
from jax import lax
from jax.experimental import pallas as pl
from jax.experimental.pallas import tpu as pltpu


# ---------------------------------------------------------------------------
# Hardware / sizing helpers
# ---------------------------------------------------------------------------
def _tpu_vmem_bytes():
    try:
        return int(pltpu.get_tpu_info().vmem_capacity_bytes)
    except Exception:
        return 64 * 1024 * 1024  # conservative fallback (v7x per-core VMEM)


def _round_up(x, m):
    return -(-int(x) // m) * m


def _tile_bytes(shape, itemsize):
    """Approximate VMEM footprint of a block under (8, 128) tiling."""
    shape = tuple(int(d) for d in shape)
    if len(shape) == 0:
        return itemsize
    if len(shape) == 1:
        return _round_up(shape[0], 128) * itemsize
    lead = 1
    for d in shape[:-2]:
        lead *= d
    return lead * _round_up(shape[-2], 8) * _round_up(shape[-1], 128) * itemsize


def _pick_batch_block(N, per_item_bytes, budget_bytes):
    """Largest divisor of N fitting the budget while keeping >=2 grid blocks
    (>=4 when N allows) so both v7x TensorCores get work and the BlockSpec
    pipeline can overlap DMA with compute."""
    target_blocks = 4 if N >= 4 else (2 if N >= 2 else 1)
    cap = max(1, N // target_blocks)
    best = 1
    for d in range(1, N + 1):
        if N % d == 0 and d <= cap and d * per_item_bytes <= budget_bytes:
            best = d
    return best


# ---------------------------------------------------------------------------
# CDC weight folding (theta corrections + pointwise + W-stride -> matrices)
# ---------------------------------------------------------------------------
def _cdc_tap_list(w_dw, theta, K, padding):
    """Depthwise CDC taps as (kh, kw, (C,)-weight) with the theta
    central-difference correction folded into the tap weights."""
    wdw = jnp.transpose(w_dw[:, 0, :, :], (1, 2, 0)).astype(jnp.float32)  # (K,K,C)
    taps = [(kh, kw, wdw[kh, kw]) for kh in range(K) for kw in range(K)]
    if abs(theta) >= 1e-8:
        wsum = jnp.sum(wdw, axis=(0, 1))
        if padding < K:
            taps = [(kh, kw,
                     (wv - theta * wsum) if (kh == padding and kw == padding) else wv)
                    for (kh, kw, wv) in taps]
        else:
            taps.append((padding, padding, -theta * wsum))
    return taps


def _build_stage_matrices(taps, w_pw, theta, W, W_out, stride, padding, C_in, C_out):
    """For each kh row offset, fold the depthwise taps of that row, the
    pointwise 1x1 CDC conv ((1-theta) factor) and the W-stride decimation into
    one (Wp*C_in, W_out*C_out) matrix:
        y[i, j*C_out+co] = sum_kh  pad_row(i*s+kh) @ M[kh]
    """
    Wp = W + 2 * padding
    pw_factor = 1.0 if abs(theta) < 1e-8 else (1.0 - theta)
    wpw = pw_factor * jnp.transpose(w_pw[:, :, 0, 0], (1, 0)).astype(jnp.float32)

    kh_vals = sorted({kh for kh, _, _ in taps})
    mats = []
    for kh in kh_vals:
        mk = jnp.zeros((Wp * C_in, W_out * C_out), jnp.float32)
        for tkh, kw, wv in taps:
            if tkh != kh:
                continue
            sel = np.zeros((Wp, W_out), np.float32)          # static selection matrix
            for j in range(W_out):
                sel[stride * j + kw, j] = 1.0
            mk = mk + jnp.kron(jnp.asarray(sel), wv[:, None] * wpw)
        mats.append(mk)
    return tuple(kh_vals), jnp.stack(mats, axis=0)           # (n_kh, Wp*C_in, W_out*C_out)


# ---------------------------------------------------------------------------
# Kernel 1: (prev-BN affine) + ReLU -> depthwise CDC -> pointwise CDC (+ stats)
# ---------------------------------------------------------------------------
def _stage_kernel(x_ref, ss_ref, m_ref, y_ref, stats_ref, pad_ref, *,
                  kh_vals, stride, padding, H, W, C_in, H_out, W_out, C_out):
    NB = x_ref.shape[0]
    Lin = W * C_in
    Lpad = pad_ref.shape[-1]
    p = padding

    # Fused previous-BN affine + ReLU (identity affine for stage 1); f32 VPU math.
    a = jnp.maximum(
        x_ref[...].astype(jnp.float32) * ss_ref[0:1, :] + ss_ref[1:2, :], 0.0)

    # On-chip zero padding with halo-only zeroing (interior fully overwritten).
    if p > 0:
        zrow = jnp.zeros((NB, p, Lpad), jnp.float32)
        pad_ref[:, 0:p, :] = zrow
        pad_ref[:, p + H:p + H + p, :] = zrow
        zcol = jnp.zeros((NB, H, p * C_in), jnp.float32)
        pad_ref[:, p:p + H, 0:p * C_in] = zcol
        pad_ref[:, p:p + H, p * C_in + Lin:Lpad] = zcol
        pad_ref[:, p:p + H, p * C_in:p * C_in + Lin] = a
    else:
        pad_ref[...] = a

    # Depthwise CDC taps + pointwise 1x1 CDC + W-stride decimation, one matmul
    # per kh row offset (MXU, f32 accumulation).  H-stride via strided ref load.
    rows = NB * H_out
    acc = jnp.zeros((rows, W_out * C_out), jnp.float32)
    for idx, kh in enumerate(kh_vals):
        if stride == 1:
            lhs = pad_ref[:, kh:kh + H_out, :]
        else:
            lhs = pad_ref[:, pl.ds(kh, H_out, stride), :]
        lhs2 = lhs.reshape(rows, Lpad).astype(m_ref.dtype)
        acc = acc + jnp.dot(lhs2, m_ref[idx], preferred_element_type=jnp.float32)

    y = acc.astype(y_ref.dtype)
    y_ref[...] = y.reshape(NB, H_out, W_out * C_out)

    # Per-block BatchNorm partials from the stored (rounded) values:
    # per-lane sum and mean-centred sum of squares; merged with a Chan-style
    # parallel-variance combine in the wrapper.
    yf = y.astype(jnp.float32)
    csum = jnp.sum(yf, axis=0, keepdims=True)
    cmean = csum * (1.0 / rows)
    cm2 = jnp.sum((yf - cmean) ** 2, axis=0, keepdims=True)
    stats_ref[0, 0:1, :] = csum
    stats_ref[0, 1:2, :] = cm2


def _stage_forward(x_fused, w_dw, w_pw, pre_scale, pre_shift, *, N, H, W,
                   C_in, C_out, kernel_size, stride, padding, theta,
                   act_dtype, mxu_dtype, vmem_bytes):
    K, s, p = kernel_size, stride, padding
    H_out = (H + 2 * p - K) // s + 1
    W_out = (W + 2 * p - K) // s + 1
    Hp = H + 2 * p
    Lin, Lpad, Lout = W * C_in, (W + 2 * p) * C_in, W_out * C_out

    taps = _cdc_tap_list(w_dw, theta, K, p)
    kh_vals, M = _build_stage_matrices(taps, w_pw, theta, W, W_out, s, p, C_in, C_out)
    M = M.astype(mxu_dtype)

    # Per-channel scale/shift of the *previous* BN, pre-tiled along the fused
    # W*C lane axis (identity for stage 1).
    ss = jnp.stack([jnp.tile(pre_scale.astype(jnp.float32), W),
                    jnp.tile(pre_shift.astype(jnp.float32), W)], axis=0)

    act_isz = jnp.dtype(act_dtype).itemsize
    mxu_isz = jnp.dtype(mxu_dtype).itemsize
    fixed = (2 * _tile_bytes((len(kh_vals), Lpad, Lout), mxu_isz)
             + 2 * _tile_bytes((2, Lin), 4))
    per_item = (2 * _tile_bytes((H, Lin), act_isz)            # x, double buffered
                + 2 * _tile_bytes((H_out, Lout), act_isz)     # y, double buffered
                + _tile_bytes((Hp, Lpad), 4)                  # padded scratch
                + 2 * _tile_bytes((H_out, Lpad), 4)           # live lhs values
                + 2 * _tile_bytes((H_out, Lout), 4))          # live acc / y values
    budget = max(2 * 1024 * 1024, vmem_bytes // 4) - fixed
    NB = _pick_batch_block(N, per_item, budget)
    n_blocks = N // NB

    kernel = functools.partial(
        _stage_kernel, kh_vals=kh_vals, stride=s, padding=p, H=H, W=W,
        C_in=C_in, H_out=H_out, W_out=W_out, C_out=C_out)

    y, stats = pl.pallas_call(
        kernel,
        out_shape=[
            jax.ShapeDtypeStruct((N, H_out, Lout), act_dtype),
            jax.ShapeDtypeStruct((n_blocks, 2, Lout), jnp.float32),
        ],
        grid_spec=pltpu.PrefetchScalarGridSpec(
            num_scalar_prefetch=0,
            grid=(n_blocks,),
            in_specs=[
                pl.BlockSpec((NB, H, Lin), lambda n: (n, 0, 0)),
                pl.BlockSpec((2, Lin), lambda n: (0, 0)),
                pl.BlockSpec((len(kh_vals), Lpad, Lout), lambda n: (0, 0, 0)),
            ],
            out_specs=[
                pl.BlockSpec((NB, H_out, Lout), lambda n: (n, 0, 0)),
                pl.BlockSpec((1, 2, Lout), lambda n: (n, 0, 0)),
            ],
            scratch_shapes=[pltpu.VMEM((NB, Hp, Lpad), jnp.float32)],
        ),
        compiler_params=pltpu.CompilerParams(
            dimension_semantics=("parallel",),
            vmem_limit_bytes=int(vmem_bytes * 3 // 4)),
    )(x_fused.astype(act_dtype), ss, M)

    return y, stats, H_out, W_out, NB


# ---------------------------------------------------------------------------
# BatchNorm statistics merge + final lane-dense BN apply pass
# ---------------------------------------------------------------------------
def _bn_merge_stats(stats, NB, H_out, W_out, C_out, N):
    nb = stats.shape[0]
    sums = stats[:, 0, :].reshape(nb, W_out, C_out)
    m2s = stats[:, 1, :].reshape(nb, W_out, C_out)
    n_g = float(NB * H_out)                      # samples per (block, w) group
    total = float(N * H_out * W_out)
    mean = jnp.sum(sums, axis=(0, 1)) / total
    mean_g = sums / n_g
    m2 = jnp.sum(m2s, axis=(0, 1)) + n_g * jnp.sum((mean_g - mean) ** 2, axis=(0, 1))
    var = jnp.maximum(m2 / total, 0.0)           # biased (training-mode) variance
    return mean, var


def _bn_scale_shift(mean, var, gamma, beta, eps):
    scale = gamma.astype(jnp.float32) * lax.rsqrt(var + eps)
    shift = beta.astype(jnp.float32) - mean * scale
    return scale, shift


def _bn_apply_kernel(y_ref, ss_ref, o_ref):
    o_ref[...] = (y_ref[...].astype(jnp.float32) * ss_ref[0:1, :]
                  + ss_ref[1:2, :]).astype(o_ref.dtype)


def _bn_apply(y_fused, H, W, C, scale, shift, out_dtype, vmem_bytes):
    # TODO(synk): in inference mode (running stats) this affine can be folded
    # into the stage-2 matmul weights and this HBM pass dropped entirely.
    N = y_fused.shape[0]
    lanes = H * W * C                            # always a multiple of 128 here
    y2 = y_fused.reshape(N, lanes)
    ss = jnp.stack([jnp.tile(scale.astype(jnp.float32), H * W),
                    jnp.tile(shift.astype(jnp.float32), H * W)], axis=0)
    budget = max(2 * 1024 * 1024, vmem_bytes // 4)
    RB = 1
    for d in range(1, N + 1):
        if N % d == 0 and (d == N or d % 8 == 0):
            if 3 * _tile_bytes((d, lanes), 4) <= budget:
                RB = d
    out = pl.pallas_call(
        _bn_apply_kernel,
        out_shape=jax.ShapeDtypeStruct((N, lanes), out_dtype),
        grid_spec=pltpu.PrefetchScalarGridSpec(
            num_scalar_prefetch=0,
            grid=(N // RB,),
            in_specs=[
                pl.BlockSpec((RB, lanes), lambda i: (i, 0)),
                pl.BlockSpec((2, lanes), lambda i: (0, 0)),
            ],
            out_specs=pl.BlockSpec((RB, lanes), lambda i: (i, 0)),
        ),
        compiler_params=pltpu.CompilerParams(
            dimension_semantics=("parallel",),
            vmem_limit_bytes=int(vmem_bytes * 3 // 4)),
    )(y2, ss)
    return out.reshape(N, H, W * C)


# ---------------------------------------------------------------------------
# Full SepCDC_theta forward
# ---------------------------------------------------------------------------
def sepcdc_theta_forward(x_nchw, w_dw1, w_pw1, gamma1, beta1,
                         w_dw2, w_pw2, gamma2, beta2, *,
                         kernel_size, stride, padding, theta=0.0, eps=1e-5,
                         act_dtype=jnp.float32, mxu_dtype=None):
    """x_nchw: (N, C_in, H, W) -> (N, C_out, H_out, W_out), training-mode BN."""
    N, C_in, H, W = x_nchw.shape
    C_out = w_pw2.shape[0]
    if mxu_dtype is None:
        mxu_dtype = act_dtype        # set jnp.bfloat16 for peak MXU on v6e/v7x
    vmem_bytes = _tpu_vmem_bytes()

    # NCHW -> lane-fused (N, H, W*C) layout (boundary-only XLA relayout).
    x = jnp.transpose(x_nchw, (0, 2, 3, 1)).reshape(N, H, W * C_in)

    ident = jnp.ones((C_in,), jnp.float32)
    zero = jnp.zeros((C_in,), jnp.float32)

    # Stage 1: ReLU -> depthwise CDC(stride) -> pointwise CDC  (+ BN1 partials)
    y1, st1, H1, W1, NB1 = _stage_forward(
        x, w_dw1, w_pw1, ident, zero, N=N, H=H, W=W, C_in=C_in, C_out=C_in,
        kernel_size=kernel_size, stride=stride, padding=padding, theta=theta,
        act_dtype=act_dtype, mxu_dtype=mxu_dtype, vmem_bytes=vmem_bytes)
    mean1, var1 = _bn_merge_stats(st1, NB1, H1, W1, C_in, N)
    scale1, shift1 = _bn_scale_shift(mean1, var1, gamma1, beta1, eps)

    # Stage 2: (BN1 affine + ReLU fused into the kernel's input path)
    #          -> depthwise CDC(1) -> pointwise CDC  (+ BN2 partials)
    y2, st2, H2, W2, NB2 = _stage_forward(
        y1, w_dw2, w_pw2, scale1, shift1, N=N, H=H1, W=W1, C_in=C_in,
        C_out=C_out, kernel_size=kernel_size, stride=1, padding=padding,
        theta=theta, act_dtype=act_dtype, mxu_dtype=mxu_dtype,
        vmem_bytes=vmem_bytes)
    mean2, var2 = _bn_merge_stats(st2, NB2, H2, W2, C_out, N)
    scale2, shift2 = _bn_scale_shift(mean2, var2, gamma2, beta2, eps)

    # Final BatchNorm: one FMA/element on a lane-dense (N, H*W*C) layout.
    out = _bn_apply(y2, H2, W2, C_out, scale2, shift2, jnp.float32, vmem_bytes)
    out = out.reshape(N, H2, W2, C_out)
    return jnp.transpose(out, (0, 3, 1, 2))


# ---------------------------------------------------------------------------
# Pure-JAX reference (mirrors the PyTorch module, for correctness checks)
# ---------------------------------------------------------------------------
def _conv2d_cd_ref(x, w, stride, padding, groups, theta):
    dn = ("NCHW", "OIHW", "NCHW")
    out = lax.conv_general_dilated(
        x, w, (stride, stride), [(padding, padding), (padding, padding)],
        feature_group_count=groups, dimension_numbers=dn,
        precision=lax.Precision.HIGHEST)
    if abs(theta) < 1e-8:
        return out
    kdiff = jnp.sum(w, axis=(2, 3))[:, :, None, None]
    out_diff = lax.conv_general_dilated(
        x, kdiff, (stride, stride), [(0, 0), (0, 0)],
        feature_group_count=groups, dimension_numbers=dn,
        precision=lax.Precision.HIGHEST)
    return out - theta * out_diff


def _bn_ref(x, gamma, beta, eps):
    mean = jnp.mean(x, axis=(0, 2, 3), keepdims=True)
    var = jnp.mean((x - mean) ** 2, axis=(0, 2, 3), keepdims=True)
    xhat = (x - mean) * lax.rsqrt(var + eps)
    return xhat * gamma.reshape(1, -1, 1, 1) + beta.reshape(1, -1, 1, 1)


def sepcdc_theta_reference(x, w_dw1, w_pw1, g1, b1, w_dw2, w_pw2, g2, b2, *,
                           kernel_size, stride, padding, theta, eps=1e-5):
    C_in = x.shape[1]
    a = jnp.maximum(x, 0.0)
    a = _conv2d_cd_ref(a, w_dw1, stride, padding, C_in, theta)
    a = _conv2d_cd_ref(a, w_pw1, 1, 0, 1, theta)
    a = _bn_ref(a, g1, b1, eps)
    a = jnp.maximum(a, 0.0)
    a = _conv2d_cd_ref(a, w_dw2, 1, padding, C_in, theta)
    a = _conv2d_cd_ref(a, w_pw2, 1, 0, 1, theta)
    return _bn_ref(a, g2, b2, eps)


if __name__ == "__main__":
    # SepCDC_theta(C_in=4, C_out=8, kernel_size=3, stride, padding=1, theta)
    N, C_in, C_out, H, W = 2, 4, 8, 16, 16
    K = 3

    key = jax.random.PRNGKey(0)
    ks = jax.random.split(key, 9)
    x = jax.random.normal(ks[0], (N, C_in, H, W), jnp.float32)
    w_dw1 = jax.random.normal(ks[1], (C_in, 1, K, K), jnp.float32) * 0.3
    w_pw1 = jax.random.normal(ks[2], (C_in, C_in, 1, 1), jnp.float32) * 0.3
    w_dw2 = jax.random.normal(ks[3], (C_in, 1, K, K), jnp.float32) * 0.3
    w_pw2 = jax.random.normal(ks[4], (C_out, C_in, 1, 1), jnp.float32) * 0.3
    gamma1 = 1.0 + 0.1 * jax.random.normal(ks[5], (C_in,), jnp.float32)
    beta1 = 0.1 * jax.random.normal(ks[6], (C_in,), jnp.float32)
    gamma2 = 1.0 + 0.1 * jax.random.normal(ks[7], (C_out,), jnp.float32)
    beta2 = 0.1 * jax.random.normal(ks[8], (C_out,), jnp.float32)

    configs = [
        # (stride, padding, theta, act_dtype, atol)
        (1, 1, 0.7, jnp.float32, 6e-2),     # CDC path, stride 1, f32
        (2, 1, 0.7, jnp.float32, 6e-2),     # CDC path, stride 2, f32
        (1, 1, 0.0, jnp.bfloat16, 2e-1),    # plain-conv path, bf16 fast path
    ]
    for stride, padding, theta, act_dtype, atol in configs:
        out = sepcdc_theta_forward(
            x, w_dw1, w_pw1, gamma1, beta1, w_dw2, w_pw2, gamma2, beta2,
            kernel_size=K, stride=stride, padding=padding, theta=theta,
            act_dtype=act_dtype)
        out = jax.block_until_ready(out)
        ref = sepcdc_theta_reference(
            x, w_dw1, w_pw1, gamma1, beta1, w_dw2, w_pw2, gamma2, beta2,
            kernel_size=K, stride=stride, padding=padding, theta=theta)
        assert out.shape == ref.shape, (out.shape, ref.shape)
        err = float(jnp.max(jnp.abs(out - ref.astype(jnp.float32))))
        assert err < atol, ("mismatch", stride, theta, str(act_dtype), err)

    print("KERNEL_OK")
</pallas_src>

<mosaic_0001>
module attributes {stable_mosaic.version = 11 : i64} {
  func.func @_stage_kernel(%arg0: i32, %arg1: memref<1x16x64xf32, #tpu.memory_space<vmem>>, %arg2: memref<2x64xf32, #tpu.memory_space<vmem>>, %arg3: memref<3x72x64xf32, #tpu.memory_space<vmem>>, %arg4: memref<1x16x64xf32, #tpu.memory_space<vmem>>, %arg5: memref<1x2x64xf32, #tpu.memory_space<vmem>>, %arg6: memref<1x18x72xf32, #tpu.memory_space<vmem>>) attributes {dimension_semantics = [#tpu.dimension_semantics<parallel>], iteration_bounds = array<i64: 2>, scalar_prefetch = 0 : i64, scratch_operands = 1 : i64, tpu.core_type = #tpu.core_type<tc>, window_params = [{transform_indices = @transform_0, window_bounds = array<i64: 1, 16, 64>}, {pipeline_mode = #tpu.pipeline_mode<synchronous>, transform_indices = @transform_1, window_bounds = array<i64: 2, 64>}, {pipeline_mode = #tpu.pipeline_mode<synchronous>, transform_indices = @transform_2, window_bounds = array<i64: 3, 72, 64>}, {transform_indices = @transform_3, window_bounds = array<i64: 1, 16, 64>}, {transform_indices = @transform_4, window_bounds = array<i64: 1, 2, 64>}]} {
    %c0 = arith.constant 0 : index
    %c0_0 = arith.constant 0 : index
    %c0_1 = arith.constant 0 : index
    %0 = vector.load %arg1[%c0, %c0_0, %c0_1] : memref<1x16x64xf32, #tpu.memory_space<vmem>>, vector<1x16x64xf32>
    %c0_2 = arith.constant 0 : index
    %c0_3 = arith.constant 0 : index
    %1 = vector.load %arg2[%c0_2, %c0_3] : memref<2x64xf32, #tpu.memory_space<vmem>>, vector<1x64xf32>
    %2 = vector.shape_cast %1 : vector<1x64xf32> to vector<1x1x64xf32>
    %3 = vector.broadcast %2 : vector<1x1x64xf32> to vector<1x16x64xf32>
    %4 = arith.mulf %0, %3 : vector<1x16x64xf32>
    %c1 = arith.constant 1 : index
    %c0_4 = arith.constant 0 : index
    %5 = vector.load %arg2[%c1, %c0_4] : memref<2x64xf32, #tpu.memory_space<vmem>>, vector<1x64xf32>
    %6 = vector.shape_cast %5 : vector<1x64xf32> to vector<1x1x64xf32>
    %7 = vector.broadcast %6 : vector<1x1x64xf32> to vector<1x16x64xf32>
    %8 = arith.addf %4, %7 : vector<1x16x64xf32>
    %cst = arith.constant 0.000000e+00 : f32
    %9 = vector.broadcast %cst : f32 to vector<1x16x64xf32>
    %10 = arith.maximumf %8, %9 : vector<1x16x64xf32>
    %cst_5 = arith.constant 0.000000e+00 : f32
    %11 = vector.broadcast %cst_5 : f32 to vector<1x1x72xf32>
    %c0_6 = arith.constant 0 : index
    %c0_7 = arith.constant 0 : index
    %c0_8 = arith.constant 0 : index
    %12 = vector.load %arg6[%c0_6, %c0_7, %c0_8] : memref<1x18x72xf32, #tpu.memory_space<vmem>>, vector<1x1x72xf32>
    tpu.vector_store %arg6[%c0_6, %c0_7, %c0_8], %11 {strides = array<i32>} : memref<1x18x72xf32, #tpu.memory_space<vmem>>, vector<1x1x72xf32>,
    %c0_9 = arith.constant 0 : index
    %c17 = arith.constant 17 : index
    %c0_10 = arith.constant 0 : index
    %13 = vector.load %arg6[%c0_9, %c17, %c0_10] : memref<1x18x72xf32, #tpu.memory_space<vmem>>, vector<1x1x72xf32>
    tpu.vector_store %arg6[%c0_9, %c17, %c0_10], %11 {strides = array<i32>} : memref<1x18x72xf32, #tpu.memory_space<vmem>>, vector<1x1x72xf32>,
    %cst_11 = arith.constant 0.000000e+00 : f32
    %14 = vector.broadcast %cst_11 : f32 to vector<1x16x4xf32>
    %c0_12 = arith.constant 0 : index
    %c1_13 = arith.constant 1 : index
    %c0_14 = arith.constant 0 : index
    %15 = vector.load %arg6[%c0_12, %c1_13, %c0_14] : memref<1x18x72xf32, #tpu.memory_space<vmem>>, vector<1x16x4xf32>
    tpu.vector_store %arg6[%c0_12, %c1_13, %c0_14], %14 {strides = array<i32>} : memref<1x18x72xf32, #tpu.memory_space<vmem>>, vector<1x16x4xf32>,
    %c0_15 = arith.constant 0 : index
    %c1_16 = arith.constant 1 : index
    %c68 = arith.constant 68 : index
    %16 = vector.load %arg6[%c0_15, %c1_16, %c68] : memref<1x18x72xf32, #tpu.memory_space<vmem>>, vector<1x16x4xf32>
    tpu.vector_store %arg6[%c0_15, %c1_16, %c68], %14 {strides = array<i32>} : memref<1x18x72xf32, #tpu.memory_space<vmem>>, vector<1x16x4xf32>,
    %c0_17 = arith.constant 0 : index
    %c1_18 = arith.constant 1 : index
    %c4 = arith.constant 4 : index
    %17 = vector.load %arg6[%c0_17, %c1_18, %c4] : memref<1x18x72xf32, #tpu.memory_space<vmem>>, vector<1x16x64xf32>
    tpu.vector_store %arg6[%c0_17, %c1_18, %c4], %10 {strides = array<i32>} : memref<1x18x72xf32, #tpu.memory_space<vmem>>, vector<1x16x64xf32>,
    %cst_19 = arith.constant 0.000000e+00 : f32
    %18 = vector.broadcast %cst_19 : f32 to vector<16x64xf32>
    %c0_20 = arith.constant 0 : index
    %c0_21 = arith.constant 0 : index
    %c0_22 = arith.constant 0 : index
    %19 = vector.load %arg6[%c0_20, %c0_21, %c0_22] : memref<1x18x72xf32, #tpu.memory_space<vmem>>, vector<1x16x72xf32>
    %20 = vector.shape_cast %19 : vector<1x16x72xf32> to vector<16x72xf32>
    %c0_23 = arith.constant 0 : index
    %c0_24 = arith.constant 0 : index
    %c0_25 = arith.constant 0 : index
    %21 = vector.load %arg3[%c0_23, %c0_24, %c0_25] : memref<3x72x64xf32, #tpu.memory_space<vmem>>, vector<1x72x64xf32>
    %22 = vector.shape_cast %21 : vector<1x72x64xf32> to vector<72x64xf32>
    %cst_26 = arith.constant dense<0.000000e+00> : vector<16x64xf32>
    %23 = tpu.matmul %20, %22, %cst_26 {dimension_numbers = #tpu.dot_dimension_numbers<[1], [0], [0], [1], [0, 0, 1, 1], [], []>} : vector<16x72xf32>, vector<72x64xf32>, vector<16x64xf32> -> vector<16x64xf32>
    %24 = arith.addf %18, %23 : vector<16x64xf32>
    %c0_27 = arith.constant 0 : index
    %c1_28 = arith.constant 1 : index
    %c0_29 = arith.constant 0 : index
    %25 = vector.load %arg6[%c0_27, %c1_28, %c0_29] : memref<1x18x72xf32, #tpu.memory_space<vmem>>, vector<1x16x72xf32>
    %26 = vector.shape_cast %25 : vector<1x16x72xf32> to vector<16x72xf32>
    %c1_30 = arith.constant 1 : index
    %c0_31 = arith.constant 0 : index
    %c0_32 = arith.constant 0 : index
    %27 = vector.load %arg3[%c1_30, %c0_31, %c0_32] : memref<3x72x64xf32, #tpu.memory_space<vmem>>, vector<1x72x64xf32>
    %28 = vector.shape_cast %27 : vector<1x72x64xf32> to vector<72x64xf32>
    %cst_33 = arith.constant dense<0.000000e+00> : vector<16x64xf32>
    %29 = tpu.matmul %26, %28, %cst_33 {dimension_numbers = #tpu.dot_dimension_numbers<[1], [0], [0], [1], [0, 0, 1, 1], [], []>} : vector<16x72xf32>, vector<72x64xf32>, vector<16x64xf32> -> vector<16x64xf32>
    %30 = arith.addf %24, %29 : vector<16x64xf32>
    %c0_34 = arith.constant 0 : index
    %c2 = arith.constant 2 : index
    %c0_35 = arith.constant 0 : index
    %31 = vector.load %arg6[%c0_34, %c2, %c0_35] : memref<1x18x72xf32, #tpu.memory_space<vmem>>, vector<1x16x72xf32>
    %32 = vector.shape_cast %31 : vector<1x16x72xf32> to vector<16x72xf32>
    %c2_36 = arith.constant 2 : index
    %c0_37 = arith.constant 0 : index
    %c0_38 = arith.constant 0 : index
    %33 = vector.load %arg3[%c2_36, %c0_37, %c0_38] : memref<3x72x64xf32, #tpu.memory_space<vmem>>, vector<1x72x64xf32>
    %34 = vector.shape_cast %33 : vector<1x72x64xf32> to vector<72x64xf32>
    %cst_39 = arith.constant dense<0.000000e+00> : vector<16x64xf32>
    %35 = tpu.matmul %32, %34, %cst_39 {dimension_numbers = #tpu.dot_dimension_numbers<[1], [0], [0], [1], [0, 0, 1, 1], [], []>} : vector<16x72xf32>, vector<72x64xf32>, vector<16x64xf32> -> vector<16x64xf32>
    %36 = arith.addf %30, %35 : vector<16x64xf32>
    %37 = vector.shape_cast %36 : vector<16x64xf32> to vector<1x16x64xf32>
    %c0_40 = arith.constant 0 : index
    %c0_41 = arith.constant 0 : index
    %c0_42 = arith.constant 0 : index
    %38 = vector.load %arg4[%c0_40, %c0_41, %c0_42] : memref<1x16x64xf32, #tpu.memory_space<vmem>>, vector<1x16x64xf32>
    tpu.vector_store %arg4[%c0_40, %c0_41, %c0_42], %37 {strides = array<i32>} : memref<1x16x64xf32, #tpu.memory_space<vmem>>, vector<1x16x64xf32>,
    %cst_43 = arith.constant dense<0.000000e+00> : vector<64xf32>
    %39 = vector.multi_reduction <add>, %36, %cst_43 [0] : vector<16x64xf32> to vector<64xf32>
    %40 = vector.shape_cast %39 : vector<64xf32> to vector<1x64xf32>
    %cst_44 = arith.constant 6.250000e-02 : f32
    %41 = vector.broadcast %cst_44 : f32 to vector<1x64xf32>
    %42 = arith.mulf %40, %41 : vector<1x64xf32>
    %43 = vector.broadcast %42 : vector<1x64xf32> to vector<16x64xf32>
    %44 = arith.subf %36, %43 : vector<16x64xf32>
    %45 = arith.mulf %44, %44 : vector<16x64xf32>
    %cst_45 = arith.constant dense<0.000000e+00> : vector<64xf32>
    %46 = vector.multi_reduction <add>, %45, %cst_45 [0] : vector<16x64xf32> to vector<64xf32>
    %47 = vector.shape_cast %46 : vector<64xf32> to vector<1x64xf32>
    %c0_46 = arith.constant 0 : index
    %c0_47 = arith.constant 0 : index
    %c0_48 = arith.constant 0 : index
    %48 = vector.load %arg5[%c0_46, %c0_47, %c0_48] : memref<1x2x64xf32, #tpu.memory_space<vmem>>, vector<1x1x64xf32>
    %49 = vector.shape_cast %48 : vector<1x1x64xf32> to vector<1x64xf32>
    %50 = vector.shape_cast %40 : vector<1x64xf32> to vector<1x1x64xf32>
    tpu.vector_store %arg5[%c0_46, %c0_47, %c0_48], %50 {strides = array<i32>} : memref<1x2x64xf32, #tpu.memory_space<vmem>>, vector<1x1x64xf32>,
    %c0_49 = arith.constant 0 : index
    %c1_50 = arith.constant 1 : index
    %c0_51 = arith.constant 0 : index
    %51 = vector.load %arg5[%c0_49, %c1_50, %c0_51] : memref<1x2x64xf32, #tpu.memory_space<vmem>>, vector<1x1x64xf32>
    %52 = vector.shape_cast %51 : vector<1x1x64xf32> to vector<1x64xf32>
    %53 = vector.shape_cast %47 : vector<1x64xf32> to vector<1x1x64xf32>
    tpu.vector_store %arg5[%c0_49, %c1_50, %c0_51], %53 {strides = array<i32>} : memref<1x2x64xf32, #tpu.memory_space<vmem>>, vector<1x1x64xf32>,
    return
  }
  func.func @transform_0(%arg0: i32) -> (i32, i32, i32) {
    %c0_i32 = arith.constant 0 : i32
    %c0_i32_0 = arith.constant 0 : i32
    %c0_i32_1 = arith.constant 0 : i32
    return %arg0, %c0_i32, %c0_i32_0 : i32, i32, i32
  }
  func.func @transform_1(%arg0: i32) -> (i32, i32) {
    %c0_i32 = arith.constant 0 : i32
    %c0_i32_0 = arith.constant 0 : i32
    %c0_i32_1 = arith.constant 0 : i32
    return %c0_i32, %c0_i32_0 : i32, i32
  }
  func.func @transform_2(%arg0: i32) -> (i32, i32, i32) {
    %c0_i32 = arith.constant 0 : i32
    %c0_i32_0 = arith.constant 0 : i32
    %c0_i32_1 = arith.constant 0 : i32
    %c0_i32_2 = arith.constant 0 : i32
    return %c0_i32, %c0_i32_0, %c0_i32_1 : i32, i32, i32
  }
  func.func @transform_3(%arg0: i32) -> (i32, i32, i32) {
    %c0_i32 = arith.constant 0 : i32
    %c0_i32_0 = arith.constant 0 : i32
    %c0_i32_1 = arith.constant 0 : i32
    return %arg0, %c0_i32, %c0_i32_0 : i32, i32, i32
  }
  func.func @transform_4(%arg0: i32) -> (i32, i32, i32) {
    %c0_i32 = arith.constant 0 : i32
    %c0_i32_0 = arith.constant 0 : i32
    %c0_i32_1 = arith.constant 0 : i32
    return %arg0, %c0_i32, %c0_i32_0 : i32, i32, i32
  }
}

</mosaic_0001>

<bundles_post_ra>
// kernel: tpu_custom_call.1
= control target key start
LH: loop header
LB: loop body
LE: loop exit
PB: predicated region body
PF: predicated region fallthrough
CT: control target
= control target key end

     0   :  { %10 = vsyncpa [#allocation4], 0  ;;  %s1285_s0 = inlined_call_operand.vmem [shape: f32[2,16,64], index: 0, kind: input, shape index: {}]   ;;  %s1286_s1 = inlined_call_operand.vmem [shape: f32[2,64], index: 1, kind: input, shape index: {}]   ;;  %s1287_s2 = inlined_call_operand.vmem [shape: f32[3,72,64], index: 2, kind: input, shape index: {}]   ;;  %s1288_s3 = inlined_call_operand.hbm [shape: f32[2,16,64], index: 3, kind: output, shape index: {0}]   ;;  %s1289_s4 = inlined_call_operand.hbm [shape: f32[2,2,64], index: 4, kind: output, shape index: {1}]  }
   0x1   :  { %12 = vsyncpa [#allocation4 + $0x1], 0 }
   0x2   :  { %13 = vsyncpa [#allocation6], 0 }
   0x3   :  { %15 = vsyncpa [#allocation6 + $0x1], 0  ;;  %s1047_s15 = smov 0   ;;  %s1049_s16 = smov 0  }
   0x4   :  { %s1051_s17 = smov 0   ;;  %s1053_s18 = smov 0  }
   0x5 LB: > { %s1068_s19 = sadd.s32 4294967295, %s1014_s18   ;;  %s681_s20 = sadd.s32 4294967294, %s1014_s18   ;;  %s1014_s18 = sphi %s1053_s18, %s1295_s18   ;;  %s1010_s17 = sphi %s1051_s17, %s1294_s17   ;;  %s1006_s16 = sphi %s1049_s16, %s1293_s16   ;;  %s1002_s15 = sphi %s1047_s15, %s1292_s15  }
   0x6   : > { %s1072_s21 = sadd.s32 1, %s1014_s18   ;;  %s96_s22 = sadd.s32 1, %s1010_s17 }
   0x7   : > { %s93_s23 = ssub.s32 %s1014_s18, %s1072_s21  ;;  %p106_p0 = scmp.ne.s32.totalorder %s1010_s17, %s1006_s16 }
   0x8   : > { %p94_p1 = scmp.eq.s32.totalorder %s93_s23, 0  ;;  %p107_p2 = scmp.eq.s32.totalorder %s1068_s19, 1 }
   0x9   : > { %p112_p3 = scmp.ne.s32.totalorder %s1006_s16, %s1002_s15  ;;  %p113_p4 = scmp.eq.s32.totalorder %s681_s20, 1 }
   0xa   : > { %s1083_s24 = scalar_select %p94_p1, %s1010_s17, %s96_s22  }
   0xb   : > { %p1085_p5 = por %p107_p2, %p106_p0  ;;  %p1089_p6 = por %p113_p4, %p112_p3 }
   0xc   : > { %p684_p7 = scmp.ge.s32.totalorder %s1014_s18, 1  ;;  %p171_p8 = scmp.lt.s32.totalorder %s1014_s18, 3 }
   0xe   : > { %p172_p9 = pnand %p684_p7, %p171_p8 }
   0xf   : > { %p202_p10 = scmp.lt.s32.totalorder (!%p172_p9), %s1068_s19, 1  ;;  %v247_v0 = vld [vmem:[%s1287_s2] sm:$0xff] (!%p172_p9)  ;;  %v248_v1 = vld [vmem:[%s1287_s2 + $0x8] sm:$0xff] (!%p172_p9)  ;;  %vm225_vm0 = vcmask (!%p172_p9), 581632   ;;  %vm228_vm1 = vcmask (!%p172_p9), 31744   ;;  %v692_v5 = vld [vmem:[%s1287_s2 + $0x50] sm:$0xff] (!%p172_p9) }
  0x10   : > { %175 = sbr.rel (%p172_p9) target bundleno = 456 (0x1c8), region = 32  ;;  %v691_v2 = vld [vmem:[%s1287_s2 + $0x48] sm:$0xff] (!%p172_p9)  ;;  %v689_v3 = vld [vmem:[%s1286_s1] ss:$0 sm:$0xff] (!%p172_p9)  ;;  %v836_v4 = vpack.c.bf16 (!%p172_p9), %v248_v1, %v247_v0  ;;  %v249_v6 = vld [vmem:[%s1287_s2 + $0x10] sm:$0xff] (!%p172_p9)  ;;  %v1016_v8 = vmov (!%p172_p9), 0.0  }
  0x11   : > { %v250_v7 = vld [vmem:[%s1287_s2 + $0x18] sm:$0xff] (!%p172_p9)  ;;  %226 = vst.msk [vmem:[#allocation2] sm:$0x1] (!%p172_p9), %vm225_vm0, %v1016_v8  ;;  %227 = vst.msk [vmem:[#allocation2 + $0x11] sm:$0x1] (!%p172_p9), %vm225_vm0, %v1016_v8  ;;  %vm231_vm2 = vcmask (!%p172_p9), 589344   ;;  %v820_v9 = vpack.c.bf16 (!%p172_p9), %v692_v5, %v691_v2 }
  0x12   : > { %229 = vst.msk [vmem:[#allocation2 + $0x1] sm:$0xff] (!%p172_p9), %vm228_vm1, %v1016_v8  ;;  %230 = vst.msk [vmem:[#allocation2 + $0x9] sm:$0xff] (!%p172_p9), %vm228_vm1, %v1016_v8  ;;  %v840_v10 = vpack.c.bf16 (!%p172_p9), %v250_v7, %v249_v6  ;;  %v693_v11 = vld [vmem:[%s1287_s2 + $0x58] sm:$0xff] (!%p172_p9)  ;;  %v694_v12 = vld [vmem:[%s1287_s2 + $0x60] sm:$0xff] (!%p172_p9)  ;;  %837 = vmatprep.subr.bf16.mxu0 (!%p172_p9), %v836_v4  ;;  %s1017_s9 = smov (!%p172_p9), 4   ;;  %vm242_vm3 = vcmask (!%p172_p9), 556064  }
  0x13   : > { %232 = vst.msk [vmem:[#allocation2 + $0x1] sm:$0xff] (!%p172_p9), %vm231_vm2, %v1016_v8  ;;  %v251_v13 = vld [vmem:[%s1287_s2 + $0x20] sm:$0xff] (!%p172_p9)  ;;  %233 = vst.msk [vmem:[#allocation2 + $0x9] sm:$0xff] (!%p172_p9), %vm231_vm2, %v1016_v8  ;;  %v824_v14 = vpack.c.bf16 (!%p172_p9), %v694_v12, %v693_v11  ;;  %v252_v15 = vld [vmem:[%s1287_s2 + $0x28] sm:$0xff] (!%p172_p9)  ;;  %821 = vmatprep.subr.bf16.mxu1 (!%p172_p9), %v820_v9  ;;  %839 = vmatpush3.bf16.msra.mxu0 (!%p172_p9), %v836_v4  ;;  %vm268_vm4 = vcmask (!%p172_p9), 588800   ;;  %s723_s27 = sshll.u32 (!%p172_p9), %s1068_s19, 8 }
  0x14   : > { %v695_v16 = vld [vmem:[%s1287_s2 + $0x68] sm:$0xff] (!%p172_p9)  ;;  %v696_v17 = vld [vmem:[%s1287_s2 + $0x70] sm:$0xff] (!%p172_p9)  ;;  %v690_v20 = vld [vmem:[%s1286_s1 + $0x1] ss:$0 sm:$0xff] (!%p172_p9)  ;;  %823 = vmatpush3.bf16.msra.mxu1 (!%p172_p9), %v820_v9  ;;  %841 = vmatprep.subr.bf16.mxu0 (!%p172_p9), %v840_v10  ;;  %v844_v21 = vpack.c.bf16 (!%p172_p9), %v252_v15, %v251_v13  ;;  %vm526_vm5 = vcmask (!%p172_p9), 523264   ;;  %s1203_s30 = scalar_lea.hbm (!%p172_p9), %s1288_s3, %s723_s27  ;;  %s1018_s8 = smov (!%p172_p9), [#allocation3]  }
  0x15   : > { %825 = vmatprep.subr.bf16.mxu1 (!%p172_p9), %v824_v14  ;;  %v828_v24 = vpack.c.bf16 (!%p172_p9), %v696_v17, %v695_v16  ;;  %v253_v25 = vld [vmem:[%s1287_s2 + $0x30] sm:$0xff] (!%p172_p9)  ;;  %v254_v26 = vld [vmem:[%s1287_s2 + $0x38] sm:$0xff] (!%p172_p9)  ;;  %v698_v28 = vld [vmem:[%s1287_s2 + $0x80] sm:$0xff] (!%p172_p9) }
  0x16   : > { %v697_v27 = vld [vmem:[%s1287_s2 + $0x78] sm:$0xff] (!%p172_p9)  ;;  %v848_v31 = vpack.c.bf16 (!%p172_p9), %v254_v26, %v253_v25  ;;  %v255_v35 = vld [vmem:[%s1287_s2 + $0x40] sm:$0xff] (!%p172_p9)  ;;  %v704_v36 = vld [vmem:[%s1287_s2 + $0x90] sm:$0xff] (!%p172_p9) }
  0x17   : > { %s203_s7 = scalar_select %p202_p10, %s1068_s19, 1  ;;  %843 = vmatpush3.bf16.msra.mxu0 %v840_v10  ;;  %v832_v33 = vpack.c.bf16 %v698_v28, %v697_v27  ;;  %v705_v37 = vld [vmem:[%s1287_s2 + $0x98] sm:$0xff]  ;;  %v699_v38 = vld [vmem:[%s1287_s2 + $0x88] sm:$0xff]  ;;  %v706_v42 = vld [vmem:[%s1287_s2 + $0xa0] sm:$0xff] }
  0x18   : > { %827 = vmatpush3.bf16.msra.mxu1 %v824_v14  ;;  %845 = vmatprep.subr.bf16.mxu0 %v844_v21  ;;  %v852_v39 = vpack.c.bf16 %v705_v37, %v704_v36  ;;  %v707_v45 = vld [vmem:[%s1287_s2 + $0xa8] sm:$0xff]  ;;  %v708_v47 = vld [vmem:[%s1287_s2 + $0xb0] sm:$0xff]  ;;  %v709_v48 = vld [vmem:[%s1287_s2 + $0xb8] sm:$0xff] }
  0x19   : > { %s722_s5 = sshll.u32 %s203_s7, 4  ;;  %829 = vmatprep.subr.bf16.mxu1 %v828_v24  ;;  %v856_v46 = vpack.c.bf16 %v707_v45, %v706_v42  ;;  %v860_v52 = vpack.c.bf16 %v709_v48, %v708_v47  ;;  %v710_v53 = vld [vmem:[%s1287_s2 + $0xc0] sm:$0xff]  ;;  %v711_v54 = vld [vmem:[%s1287_s2 + $0xc8] sm:$0xff]  ;;  %v712_v56 = vld [vmem:[%s1287_s2 + $0xd0] sm:$0xff] }
  0x1a   : > { %s206_s20 = scalar_lea.vmem %s1285_s0, %s722_s5  ;;  %v864_v55 = vpack.c.bf16 %v711_v54, %v710_v53 }
  0x1b   : > { %v207_v18 = vld [vmem:[%s206_s20] sm:$0xff]  ;;  %v208_v19 = vld [vmem:[%s206_s20 + $0x8] sm:$0xff]  ;;  %847 = vmatpush3.bf16.msra.mxu0 %v844_v21  ;;  %s1194_s20 = sand.u32 1, %s1006_s16  }
  0x1c   : > { %v214_v22 = vmul.f32 %v689_v3, %v207_v18  ;;  %v215_v23 = vmul.f32 %v689_v3, %v208_v19  ;;  %831 = vmatpush3.bf16.msra.mxu1 %v828_v24  ;;  %849 = vmatprep.subr.bf16.mxu0 %v848_v31  ;;  %s685_s7 = sshll.u32 %s1194_s20, 4  ;;  %s556_s5 = scalar_lea.sflag [#allocation4], %s1194_s20 }
  0x1d   : > { %833 = vmatprep.subr.bf16.mxu1 %v832_v33  ;;  %s194_s22 = scalar_lea.vmem [#allocation3], %s685_s7 }
  0x1e   : > { %v221_v29 = vadd.f32 %v690_v20, %v214_v22  ;;  %v222_v30 = vadd.f32 %v690_v20, %v215_v23  ;;  %s574_s23 = sshll.u32 %s194_s22, 4  ;;  %s1198_s23 = int_to_ptr.vmem [resolvable:$true] %s574_s23 }
  0x1f   : > { %851 = vmatpush3.bf16.msra.mxu0 %v848_v31  ;;  %s920_s6 = scalar_lea.vmem %s1198_s23, 256 }
  0x20   : > { %v223_v32 = vmax.f32 %v221_v29, 0.0  ;;  %v224_v34 = vmax.f32 %v222_v30, 0.0  ;;  %835 = vmatpush3.bf16.msra.mxu1 %v832_v33  ;;  %794 = vmatprep.subr.mxu0 %v255_v35  ;;  %p921_p11 = scmp.ne.s32.totalorder %s1198_s23, %s920_s6 }
  0x21   : > { %773 = vmatprep.subr.mxu1 %v699_v38 }
  0x22   : > { %236 = vrot.lane.b32.xlu0 %v223_v32, %s1017_s9  ;;  %p922_p12 = pnand %p921_p11, %p1085_p5 }
  0x23   : > { %795 = vmatpush3.msra.mxu0 %v255_v35 }
  0x24   : > { %774 = vmatpush3.msra.mxu1 %v699_v38  ;;  %853 = vmatprep.subr.bf16.mxu0 %v852_v39  ;;  %p923_p13 = pneg %p922_p12 }
  0x26   : > { %238 = vrot.lane.b32.xlu0 %v224_v34, %s1017_s9  ;;  %s924_s9 = sshll.u32 %s1018_s8, 4  ;;  %s925_s9 = int_to_ptr.vmem [resolvable:$false] %s924_s9 }
  0x27   : > { %s926_s10 = scalar_lea.vmem %s925_s9, 512  ;;  %p927_p0 = scmp.lt.s32.totalorder %s1198_s23, %s925_s9 }
  0x28   : > { %p928_p1 = scmp.lt.s32.totalorder %s926_s10, %s920_s6 }
  0x2a   : > { %p929_p2 = por %p928_p1, %p927_p0 }
  0x2c   : > { %p930_p3 = pnand %p929_p2, %p923_p13 }
  0x94   : > { %v237_v40 = vpop.permute.xlu0 %236 }
  0x95   : > { %243 = vst.msk [vmem:[#allocation2 + $0x1] sm:$0xff] %vm242_vm3, %v237_v40 }
  0x98   : > { %v239_v41 = vpop.permute.xlu0 %238 }
  0x99   : > { %244 = vst.msk [vmem:[#allocation2 + $0x9] sm:$0xff] %vm242_vm3, %v239_v41 }
  0x9c   : > { %v256_v43 = vld [vmem:[#allocation2 + $0x1] sm:$0xff] }
  0x9d   : > { %v245_v44 = vld [vmem:[#allocation2] sm:$0xff]  ;;  %775 = vmatprep.mubr.msk.f32.mxu1 %vm268_vm4, %v256_v43 }
  0x9e   : > { %796 = vmatprep.mubr.msk.f32.mxu0 %vm268_vm4, %v245_v44 }
  0xa0   : > { %v257_v49 = vld [vmem:[#allocation2 + $0x9] sm:$0xff] }
  0xa1   : > { %v246_v50 = vld [vmem:[#allocation2 + $0x8] sm:$0xff]  ;;  %776 = vmatmul.mubr.msk.f32.vlgmr.msra.gmra.mrb[0].mxu1 %vm268_vm4, %v257_v49 }
  0xa2   : > { %v431_v51 = vld [vmem:[#allocation2 + $0x2] sm:$0xff]  ;;  %797 = vmatmul.mubr.msk.f32.vlgmr.msra.gmra.mrb[0].mxu0 %vm268_vm4, %v246_v50  ;;  %v432_v57 = vld [vmem:[#allocation2 + $0xa] sm:$0xff] }
  0xa3   : > { %855 = vmatpush3.bf16.msra.mxu0 %v852_v39  ;;  %817 = vmatprep.mubr.msk.f32.mxu0 %vm268_vm4, %v431_v51 }
  0xa4   : > { %857 = vmatprep.subr.bf16.mxu0 %v856_v46 }
  0xa7   : > { %859 = vmatpush3.bf16.msra.mxu0 %v856_v46 }
  0xa8   : > { %861 = vmatprep.subr.bf16.mxu0 %v860_v52 }
  0xab   : > { %863 = vmatpush3.bf16.msra.mxu0 %v860_v52 }
  0xac   : > { %865 = vmatprep.subr.bf16.mxu0 %v864_v55 }
  0xaf   : > { %867 = vmatpush3.bf16.msra.mxu0 %v864_v55 }
  0xb0   : > { %815 = vmatprep.subr.mxu0 %v712_v56 }
  0xb3   : > { %816 = vmatpush3.msra.mxu0 %v712_v56 }
  0xb4   : > { %818 = vmatmul.mubr.msk.f32.vlgmr.msra.gmra.mrb[0].mxu0 %vm268_vm4, %v432_v57 }
 0x174   : > { %v777_v58 = vpop.f32.mrb[0].mxu1 }
 0x175   : > { %v341_v59 = vpop.f32.mrb[1].mxu1 }
 0x187   : > { %v819_v60 = vpop.f32.mrb[0].mxu0 }
 0x188   : > { %v868_v61 = vadd.f32 %v819_v60, %v777_v58  ;;  %v515_v62 = vpop.f32.mrb[1].mxu0 }
 0x189   : > { %v869_v63 = vadd.f32 %v515_v62, %v341_v59 }
 0x18a   : > { %528 = vst.msk [vmem:[%s194_s22 + $0x8] sm:$0xff] %vm526_vm5, %v868_v61  ;;  %v530_v0 = vsel %vm526_vm5, %v868_v61, 0.0 }
 0x18b   : > { %527 = vst.msk [vmem:[%s194_s22] sm:$0xff] %vm526_vm5, %v869_v63  ;;  %v529_v1 = vsel %vm526_vm5, %v869_v63, 0.0 }
 0x18c   : > { %v531_v2 = vadd.f32 %v530_v0, %v529_v1 }
 0x18d   : > { %933 = shalt.err (!%p930_p3)
}
 0x18e   : > { %s934_s11 = scalar_lea.hbm %s1203_s30, 256  ;;  %s938_s14 = scalar_lea.hbm %s1288_s3, 512 }
 0x18f   : > { %p935_p4 = scmp.ne.s32.totalorder %s1203_s30, %s934_s11  ;;  %p939_p9 = scmp.lt.u32.totalorder %s1203_s30, %s1288_s3 }
 0x190   : > { %p940_p10 = scmp.lt.u32.totalorder %s938_s14, %s934_s11  ;;  %p942_p12 = scmp.lt.u32.totalorder %s934_s11, %s1203_s30 }
 0x191   : > { %p936_p7 = pnand %p935_p4, %p1085_p5 }
 0x192   : > { %p941_p11 = por %p940_p10, %p939_p9 }
 0x193   : > { %p937_p8 = pneg %p936_p7 }
 0x194   : > { %p943_p13 = por %p942_p12, %p941_p11 }
 0x196   : > { %p944_p0 = pnand %p943_p13, %p937_p8 }
 0x198   : > { %947 = shalt.err (!%p944_p0)
}
 0x199   : > { %s1019_s27 = smov 128   ;;  %s1020_s28 = smov 8   ;;  %v532_v3 = vrot.slane %v531_v2, 4  ;;  %vm552_vm6 = vcmask 516096  }
 0x19a   : > { %872 = dma.vmem_to_hbm [thread:$0]  (%p1085_p5), %s1198_s23, 256, %s1203_s30, %s556_s5, %s1019_s27, %s1019_s27, %s1020_s28  }
 0x19b   : > { %v533_v4 = vadd.f32 %v532_v3, %v531_v2  ;;  %s686_s29 = sshll.u32 %s1194_s20, 1  ;;  %s719_s23 = sshll.u32 %s1068_s19, 5 }
 0x19c   : > { %s201_s6 = scalar_lea.vmem [#allocation5], %s686_s29  ;;  %s1241_s9 = scalar_lea.hbm %s1289_s4, %s719_s23 }
 0x19d   : > { %v534_v5 = vrot.slane %v533_v4, 2  ;;  %s590_s30 = sshll.u32 %s201_s6, 4  ;;  %s561_s10 = scalar_lea.sflag [#allocation6], %s1194_s20  ;;  %s1243_s30 = int_to_ptr.vmem [resolvable:$true] %s590_s30 }
 0x19e   : > { %s948_s11 = scalar_lea.vmem %s1243_s30, 32  ;;  %s1021_s19 = smov [#allocation5]  }
 0x19f   : > { %v535_v6 = vadd.f32 %v534_v5, %v533_v4  ;;  %p949_p1 = scmp.ne.s32.totalorder %s1243_s30, %s948_s11  ;;  %s952_s12 = sshll.u32 %s1021_s19, 4  ;;  %s953_s12 = int_to_ptr.vmem [resolvable:$false] %s952_s12 }
 0x1a0   : > { %s954_s13 = scalar_lea.vmem %s953_s12, 64  ;;  %p955_p4 = scmp.lt.s32.totalorder %s1243_s30, %s953_s12 }
 0x1a1   : > { %v536_v7 = vrot.slane %v535_v6, 1  ;;  %p950_p2 = pnand %p949_p1, %p1085_p5  ;;  %p956_p7 = scmp.lt.s32.totalorder %s954_s13, %s948_s11 }
 0x1a3   : > { %v537_v8 = vadd.f32 %v536_v7, %v535_v6  ;;  %p951_p3 = pneg %p950_p2  ;;  %p957_p8 = por %p956_p7, %p955_p4 }
 0x1a5   : > { %v538_v9 = vmul.f32 0.0625, %v537_v8  ;;  %553 = vst.msk [vmem:[%s201_s6] sm:$0x1] %vm552_vm6, %v537_v8  ;;  %p958_p9 = pnand %p957_p8, %p951_p3 }
 0x1a7   : > { %v539_v10 = vsub.f32 %v869_v63, %v538_v9  ;;  %v540_v11 = vsub.f32 %v868_v61, %v538_v9 }
 0x1a9   : > { %v541_v12 = vmul.f32 %v539_v10, %v539_v10  ;;  %v542_v13 = vmul.f32 %v540_v11, %v540_v11 }
 0x1ab   : > { %v543_v14 = vsel %vm526_vm5, %v541_v12, 0.0  ;;  %v544_v15 = vsel %vm526_vm5, %v542_v13, 0.0 }
 0x1ac   : > { %v545_v16 = vadd.f32 %v544_v15, %v543_v14 }
 0x1ae   : > { %v546_v17 = vrot.slane %v545_v16, 4 }
 0x1b0   : > { %v547_v18 = vadd.f32 %v546_v17, %v545_v16 }
 0x1b2   : > { %v548_v19 = vrot.slane %v547_v18, 2 }
 0x1b4   : > { %v549_v20 = vadd.f32 %v548_v19, %v547_v18 }
 0x1b6   : > { %v550_v21 = vrot.slane %v549_v20, 1 }
 0x1b8   : > { %v551_v22 = vadd.f32 %v550_v21, %v549_v20 }
 0x1ba   : > { %554 = vst.msk [vmem:[%s201_s6 + $0x1] sm:$0x1] %vm552_vm6, %v551_v22 }
 0x1bb   : > { %961 = shalt.err (!%p958_p9)
}
 0x1bc   : > { %s962_s20 = scalar_lea.hbm %s1241_s9, 32  ;;  %s966_s22 = scalar_lea.hbm %s1289_s4, 64 }
 0x1bd   : > { %p963_p10 = scmp.ne.s32.totalorder %s1241_s9, %s962_s20  ;;  %p967_p13 = scmp.lt.u32.totalorder %s1241_s9, %s1289_s4 }
 0x1be   : > { %p968_p0 = scmp.lt.u32.totalorder %s966_s22, %s962_s20  ;;  %p970_p2 = scmp.lt.u32.totalorder %s962_s20, %s1241_s9 }
 0x1bf   : > { %p964_p11 = pnand %p963_p10, %p1085_p5 }
 0x1c0   : > { %p969_p1 = por %p968_p0, %p967_p13 }
 0x1c1   : > { %p965_p12 = pneg %p964_p11 }
 0x1c2   : > { %p971_p3 = por %p970_p2, %p969_p1 }
 0x1c4   : > { %p972_p4 = pnand %p971_p3, %p965_p12 }
 0x1c6   : > { %975 = shalt.err (!%p972_p4)
}
 0x1c7   : > { %873 = dma.vmem_to_hbm [thread:$0]  (%p1085_p5), %s1243_s30, 32, %s1241_s9, %s561_s10  }
 0x1c8 PF: > { %p883_p7 = scmp.ge.s32.totalorder %s1014_s18, 2  ;;  %s602_s29 = sand.u32 1, %s1002_s15  }
 0x1c9   : > { %s603_s6 = scalar_lea.sflag [#allocation4], %s602_s29 }
 0x1ca   : > { %p877_p8 = pnand %p883_p7, %p1089_p6 }
 0x1cc   : > { %993 = dma.done.wait (!%p877_p8), %s603_s6, 256  }
 0x1cd   : > { %995 = vsyncadd (!%p877_p8), %s603_s6, 4294967040  ;;  %s612_s23 = scalar_lea.sflag [#allocation6], %s602_s29 }
 0x1ce   : > { %997 = dma.done.wait (!%p877_p8), %s612_s23, 32  }
 0x1cf   : > { %999 = vsyncadd (!%p877_p8), %s612_s23, 4294967264  ;;  %p18_p5 = scmp.ge.s32.totalorder %s1072_s21, 4   ;;  %s1292_s15 = smov %s1006_s16 }
 0x1d0   : > { %s1293_s16 = smov %s1010_s17  ;;  %s1294_s17 = smov %s1083_s24 }
 0x1d1   : > { %s1295_s18 = smov %s1072_s21  ;;  %20 = sbr.rel (!%p18_p5) target bundleno = 5 (0x5), region = 86 }
 0x1d8   :  { %617 = vsyncpa [#allocation4], 1 }
 0x1d9   :  { %619 = vsyncpa [#allocation4 + $0x1], 1 }
 0x1da   :  { %620 = vsyncpa [#allocation6], 1 }
 0x1db   :  { %622 = vsyncpa [#allocation6 + $0x1], 1 }

</bundles_post_ra>
